<compile_context>
chip_gen: v7x
topology: tpu7x:2x2x1
jax: 0.10.0
libtpu: 0.0.40
codegen_flags: <defaults>
</compile_context>

<pallas_src>
import math
from functools import partial

import jax
import jax.numpy as jnp
from jax.experimental import pallas as pl
from jax.experimental.pallas import tpu as pltpu


def _mog_logprob_kernel(zt_ref, w_ref, c_ref, out_ref):
    """One batch tile; batch on the lane axis.

    zt_ref : (M, TB)   latents, transposed                     (pipelined)
    w_ref  : (K, 2M)   [inv_var | -2*mu*inv_var]               (grid-resident)
    c_ref  : (K, 1)    fused per-component constant            (grid-resident)
    out_ref: (1, TB)   mixture log-prob, lane-dense row
    """
    zt = zt_ref[...]                                           # (M, TB) f32
    a = jnp.concatenate([zt * zt, zt], axis=0)                 # (2M, TB)
    # quad[k, b] = sum_m z^2*iv - 2*z*mu*iv   (mu^2*iv folded into c)
    quad = jnp.dot(w_ref[...], a,
                   preferred_element_type=jnp.float32)         # (K, TB) via MXU
    logp = c_ref[...] - 0.5 * quad                             # (K, TB)

    # logsumexp over the K mixture components (sublane axis).
    m = jnp.max(logp, axis=0, keepdims=True)                   # (1, TB)
    s = jnp.sum(jnp.exp(logp - m), axis=0, keepdims=True)      # (1, TB)
    out_ref[...] = m + jnp.log(s)


def _choose_tile(B: int, requested: int) -> int:
    tile = max(128, (min(requested, 2048) // 128) * 128)
    # Keep the batch grid at >= 2 steps when possible so v7x's two TensorCores
    # (dimension_semantics=("parallel",)) both get work; harmless on v5e/v6e.
    if B >= 256:
        tile = min(tile, max(128, ((B // 2) // 128) * 128))
    return tile


@partial(jax.jit, static_argnames=("tile_b",))
def mog_prior_log_prob(z, means, logvars, weights, *, tile_b=1024):
    """log_prob(z) under MoGPrior().forward()'s distribution. z: (B, M)."""
    B, M = z.shape
    K, M2 = means.shape
    assert M == M2 and logvars.shape == (K, M) and weights.shape == (K,)
    f32 = jnp.float32

    # ---- grid-invariant parameter transforms from forward(), hoisted here -----
    mu = jnp.clip(means.astype(f32), -4.0, 4.0)                     # (K, M)
    std = jnp.clip(jnp.exp(0.5 * logvars.astype(f32)), -4.0, 4.0)   # (K, M)
    # TODO(synk): the -4 lower clamp is a no-op on exp(); if numerical safety was
    # intended, the lower bound should be a small positive epsilon (kept as spec'd).
    inv_var = 1.0 / (std * std)
    w_mat = jnp.concatenate([inv_var, -2.0 * mu * inv_var], axis=1)  # (K, 2M)
    log_w = jax.nn.log_softmax(weights.astype(f32))                  # (K,)
    c = (log_w
         - jnp.sum(jnp.log(std), axis=-1)
         - 0.5 * M * math.log(2.0 * math.pi)
         - 0.5 * jnp.sum(mu * mu * inv_var, axis=-1)).reshape(K, 1)  # (K, 1)

    # One-time transpose so batch lands on the lane axis (lane-dense kernel math
    # and a lane-dense output row); sanctioned wrapper-side layout plumbing.
    zt = z.astype(f32).T                                             # (M, B)

    tile = _choose_tile(B, tile_b)
    grid_b = pl.cdiv(B, tile)

    out = pl.pallas_call(
        _mog_logprob_kernel,
        out_shape=jax.ShapeDtypeStruct((1, B), f32),
        grid=(grid_b,),
        in_specs=[
            pl.BlockSpec((M, tile), lambda i: (0, i)),        # z^T: pipelined tiles
            pl.BlockSpec((K, 2 * M), lambda i: (0, 0)),       # packed params: resident
            pl.BlockSpec((K, 1), lambda i: (0, 0)),           # constants: resident
        ],
        out_specs=pl.BlockSpec((1, tile), lambda i: (0, i)),
        compiler_params=pltpu.CompilerParams(
            dimension_semantics=("parallel",)),
        cost_estimate=pl.CostEstimate(
            flops=B * (4 * K * M + 6 * K + 8),
            transcendentals=B * (K + 1),
            bytes_accessed=4 * (B * M + B + 2 * K * M + K),
        ),
    )(zt, w_mat, c)
    return out[0, :B]


if __name__ == "__main__":
    key = jax.random.PRNGKey(0)
    M, K = 32, 8              # latent dimension, number of mixture components
    B = 256                   # batch of latent samples

    k_means, k_logvars, k_w, k_z = jax.random.split(key, 4)
    # Parameters analogous to the module's nn.Parameters; scaled so the clamp and
    # softmax branches of forward() are actually exercised.
    means = 2.5 * jax.random.normal(k_means, (K, M), jnp.float32)
    logvars = 0.5 * jax.random.normal(k_logvars, (K, M), jnp.float32)
    weights = jax.random.normal(k_w, (K,), jnp.float32)
    z = jax.random.normal(k_z, (B, M), jnp.float32)

    lp = mog_prior_log_prob(z, means, logvars, weights)
    jax.block_until_ready(lp)

    # Pure-JAX reference of MoGPrior().forward().log_prob(z).
    log_w_ref = jax.nn.log_softmax(weights)
    mu_ref = jnp.clip(means, -4.0, 4.0)
    std_ref = jnp.clip(jnp.exp(0.5 * logvars), -4.0, 4.0)
    d_ref = (z[:, None, :] - mu_ref[None, :, :]) / std_ref[None, :, :]
    comp_ref = jnp.sum(-0.5 * d_ref * d_ref - jnp.log(std_ref)[None, :, :]
                       - 0.5 * math.log(2.0 * math.pi), axis=-1)
    ref = jax.scipy.special.logsumexp(comp_ref + log_w_ref[None, :], axis=-1)

    assert lp.shape == (B,)
    assert jnp.allclose(lp, ref, rtol=1e-3, atol=1e-3), float(
        jnp.max(jnp.abs(lp - ref)))
    print("KERNEL_OK")
</pallas_src>

<mosaic_0001>
module attributes {stable_mosaic.version = 11 : i64} {
  func.func @_mog_logprob_kernel(%arg0: i32, %arg1: memref<32x128xf32, #tpu.memory_space<vmem>>, %arg2: memref<8x64xf32, #tpu.memory_space<vmem>>, %arg3: memref<8x1xf32, #tpu.memory_space<vmem>>, %arg4: memref<1x128xf32, #tpu.memory_space<vmem>>) attributes {dimension_semantics = [#tpu.dimension_semantics<parallel>], iteration_bounds = array<i64: 2>, scalar_prefetch = 0 : i64, scratch_operands = 0 : i64, tpu.core_type = #tpu.core_type<tc>, window_params = [{transform_indices = @transform_0, window_bounds = array<i64: 32, 128>}, {pipeline_mode = #tpu.pipeline_mode<synchronous>, transform_indices = @transform_1, window_bounds = array<i64: 8, 64>}, {pipeline_mode = #tpu.pipeline_mode<synchronous>, transform_indices = @transform_2, window_bounds = array<i64: 8, 1>}, {transform_indices = @transform_3, window_bounds = array<i64: 1, 128>}]} {
    %c0 = arith.constant 0 : index
    %c0_0 = arith.constant 0 : index
    %0 = vector.load %arg1[%c0, %c0_0] : memref<32x128xf32, #tpu.memory_space<vmem>>, vector<32x128xf32>
    %1 = arith.mulf %0, %0 : vector<32x128xf32>
    %2 = tpu.concatenate %1, %0 in 0 : vector<32x128xf32>, vector<32x128xf32> -> vector<64x128xf32>
    %c0_1 = arith.constant 0 : index
    %c0_2 = arith.constant 0 : index
    %3 = vector.load %arg2[%c0_1, %c0_2] : memref<8x64xf32, #tpu.memory_space<vmem>>, vector<8x64xf32>
    %cst = arith.constant dense<0.000000e+00> : vector<8x128xf32>
    %4 = tpu.matmul %3, %2, %cst {dimension_numbers = #tpu.dot_dimension_numbers<[1], [0], [0], [1], [0, 0, 1, 1], [], []>} : vector<8x64xf32>, vector<64x128xf32>, vector<8x128xf32> -> vector<8x128xf32>
    %c0_3 = arith.constant 0 : index
    %c0_4 = arith.constant 0 : index
    %5 = vector.load %arg3[%c0_3, %c0_4] : memref<8x1xf32, #tpu.memory_space<vmem>>, vector<8x1xf32>
    %cst_5 = arith.constant 5.000000e-01 : f32
    %6 = vector.broadcast %cst_5 : f32 to vector<8x128xf32>
    %7 = arith.mulf %6, %4 : vector<8x128xf32>
    %8 = vector.broadcast %5 : vector<8x1xf32> to vector<8x128xf32>
    %9 = arith.subf %8, %7 : vector<8x128xf32>
    %cst_6 = arith.constant dense<0xFF800000> : vector<128xf32>
    %10 = vector.multi_reduction <maximumf>, %9, %cst_6 [0] : vector<8x128xf32> to vector<128xf32>
    %11 = vector.shape_cast %10 : vector<128xf32> to vector<1x128xf32>
    %12 = vector.broadcast %11 : vector<1x128xf32> to vector<8x128xf32>
    %13 = arith.subf %9, %12 : vector<8x128xf32>
    %14 = math.exp %13 : vector<8x128xf32>
    %cst_7 = arith.constant dense<0.000000e+00> : vector<128xf32>
    %15 = vector.multi_reduction <add>, %14, %cst_7 [0] : vector<8x128xf32> to vector<128xf32>
    %16 = vector.shape_cast %15 : vector<128xf32> to vector<1x128xf32>
    %17 = math.log %16 : vector<1x128xf32>
    %18 = arith.addf %11, %17 : vector<1x128xf32>
    %c0_8 = arith.constant 0 : index
    %c0_9 = arith.constant 0 : index
    %19 = vector.load %arg4[%c0_8, %c0_9] : memref<1x128xf32, #tpu.memory_space<vmem>>, vector<1x128xf32>
    tpu.vector_store %arg4[%c0_8, %c0_9], %18 {strides = array<i32>} : memref<1x128xf32, #tpu.memory_space<vmem>>, vector<1x128xf32>,
    return
  }
  func.func @transform_0(%arg0: i32) -> (i32, i32) {
    %c0_i32 = arith.constant 0 : i32
    %c0_i32_0 = arith.constant 0 : i32
    return %c0_i32, %arg0 : i32, i32
  }
  func.func @transform_1(%arg0: i32) -> (i32, i32) {
    %c0_i32 = arith.constant 0 : i32
    %c0_i32_0 = arith.constant 0 : i32
    %c0_i32_1 = arith.constant 0 : i32
    return %c0_i32, %c0_i32_0 : i32, i32
  }
  func.func @transform_2(%arg0: i32) -> (i32, i32) {
    %c0_i32 = arith.constant 0 : i32
    %c0_i32_0 = arith.constant 0 : i32
    %c0_i32_1 = arith.constant 0 : i32
    return %c0_i32, %c0_i32_0 : i32, i32
  }
  func.func @transform_3(%arg0: i32) -> (i32, i32) {
    %c0_i32 = arith.constant 0 : i32
    %c0_i32_0 = arith.constant 0 : i32
    return %c0_i32, %arg0 : i32, i32
  }
}

</mosaic_0001>

<bundles_post_ra>
// kernel: mog_prior_log_prob.1
= control target key start
LH: loop header
LB: loop body
LE: loop exit
PB: predicated region body
PF: predicated region fallthrough
CT: control target
= control target key end

     0   :  { %8 = vsyncpa [#allocation4], 0  ;;  %s702_s0 = inlined_call_operand.vmem [shape: f32[32,256], index: 0, kind: input, shape index: {}]   ;;  %s703_s1 = inlined_call_operand.vmem [shape: f32[8,64], index: 1, kind: input, shape index: {}]   ;;  %s704_s2 = inlined_call_operand.vmem [shape: f32[8,1], index: 2, kind: input, shape index: {}]   ;;  %s705_s3 = inlined_call_operand.hbm [shape: f32[1,256], index: 3, kind: output, shape index: {}]  }
   0x1   :  { %10 = vsyncpa [#allocation4 + $0x1], 0  ;;  %s586_s12 = smov 0   ;;  %s588_s13 = smov 0  }
   0x2   :  { %s590_s14 = smov 0   ;;  %s592_s15 = smov 0  }
   0x3 LB: > { %s397_s16 = sadd.s32 4294967295, %s559_s15   ;;  %s398_s17 = sadd.s32 4294967294, %s559_s15   ;;  %s559_s15 = sphi %s592_s15, %s711_s15   ;;  %s555_s14 = sphi %s590_s14, %s710_s14   ;;  %s551_s13 = sphi %s588_s13, %s709_s13   ;;  %s547_s12 = sphi %s586_s12, %s708_s12  }
   0x4   : > { %s609_s18 = sadd.s32 1, %s559_s15   ;;  %s23_s19 = sadd.s32 1, %s555_s14 }
   0x5   : > { %s20_s20 = ssub.s32 %s559_s15, %s609_s18  ;;  %p30_p0 = scmp.ne.s32.totalorder %s555_s14, %s551_s13 }
   0x6   : > { %p21_p1 = scmp.eq.s32.totalorder %s20_s20, 0  ;;  %p31_p2 = scmp.eq.s32.totalorder %s559_s15, 0 }
   0x7   : > { %p102_p3 = scmp.eq.s32.totalorder %s397_s16, 1  ;;  %p107_p4 = scmp.ne.s32.totalorder %s551_s13, %s547_s12 }
   0x8   : > { %s622_s21 = scalar_select %p21_p1, %s555_s14, %s23_s19  }
   0x9   : > { %p32_p5 = por %p31_p2, %p30_p0  ;;  %p624_p6 = por %p102_p3, %p30_p0 }
   0xa   : > { %p108_p7 = scmp.eq.s32.totalorder %s398_s17, 1  ;;  %p400_p9 = scmp.ge.s32.totalorder %s559_s15, 2 }
   0xc   : > { %p628_p8 = por %p108_p7, %p107_p4  ;;  %130 = sbr.rel (%p400_p9) target bundleno = 26 (0x1a), region = 24 }
  0x13   : > { %133 = sbr.rel (!%p32_p5) target bundleno = 26 (0x1a), region = 28  ;;  %s135_s24 = sand.u32 (%p32_p5), 1, %s555_s14  }
  0x14   : > { %s402_s25 = sshll.u32 (%p32_p5), %s559_s15, 3  ;;  %s401_s26 = sshll.u32 (%p32_p5), %s135_s24, 5 }
  0x15   : > { %s139_s29 = scalar_lea.vmem (%p32_p5), %s702_s0, %s402_s25  ;;  %s137_s30 = scalar_lea.vmem (%p32_p5), [#allocation2], %s401_s26 }
  0x16   : > { %v173_v0 = vld [vmem:[%s139_s29] sm:$0xff] (%p32_p5)  ;;  %v175_v1 = vld [vmem:[%s139_s29 + $0x10] sm:$0xff] (%p32_p5) }
  0x17   : > { %v177_v2 = vld [vmem:[%s139_s29 + $0x20] sm:$0xff] (%p32_p5)  ;;  %174 = vst [vmem:[%s137_s30] sm:$0xff] (%p32_p5), %v173_v0  ;;  %176 = vst [vmem:[%s137_s30 + $0x8] sm:$0xff] (%p32_p5), %v175_v1  ;;  %v179_v3 = vld [vmem:[%s139_s29 + $0x30] sm:$0xff] (%p32_p5) }
  0x18   : > { %178 = vst [vmem:[%s137_s30 + $0x10] sm:$0xff] (%p32_p5), %v177_v2  ;;  %180 = vst [vmem:[%s137_s30 + $0x18] sm:$0xff] (%p32_p5), %v179_v3 }
  0x1a PF: > { %p403_p10 = scmp.ge.s32.totalorder %s559_s15, 1  ;;  %p185_p11 = scmp.lt.s32.totalorder %s559_s15, 3 }
  0x1c   : > { %p186_p12 = pnand %p403_p10, %p185_p11 }
  0x1d   : > { %s643_s4 = sand.u32 (!%p186_p12), 1, %s551_s13   ;;  %v561_v4 = vmov (!%p186_p12), 0.0|0.0   ;;  %vm562_vm0 = vmmov (!%p186_p12), 0   ;;  %v563_v5 = vmov (!%p186_p12), 0.0   ;;  %v297_v6 = vld [vmem:[%s704_s2] sm:$0xff] (!%p186_p12)  ;;  %v564_v7 = vmov (!%p186_p12), 0  }
  0x1e   : > { %189 = sbr.rel (%p186_p12) target bundleno = 336 (0x150), region = 66  ;;  %437 = vmatprep.subr.bf16.mxu0 (!%p186_p12), %v561_v4  ;;  %s404_s5 = sshll.u32 (!%p186_p12), %s643_s4, 5  ;;  %434 = vmatprep.mubr.msk.f32.mxu0 (!%p186_p12), %vm562_vm0, %v563_v5  ;;  %v222_v20 = vld [vmem:[%s703_s1] sm:$0xff] (!%p186_p12)  ;;  %vm223_vm1 = vcmask (!%p186_p12), 523264  }
  0x1f   : > { %492 = vset.pattern.permute.xlu0 (!%p186_p12), %v564_v7  ;;  %s194_s8 = scalar_lea.vmem (!%p186_p12), [#allocation2], %s404_s5  ;;  %s406_s11 = sshll.u32 (!%p186_p12), %s397_s16, 4 }
  0x20   : > { %v214_v8 = vld [vmem:[%s194_s8] sm:$0xff] (!%p186_p12)  ;;  %v215_v9 = vld [vmem:[%s194_s8 + $0x8] sm:$0xff] (!%p186_p12)  ;;  %v216_v10 = vld [vmem:[%s194_s8 + $0x10] sm:$0xff] (!%p186_p12)  ;;  %301 = vperm.xlu0 (!%p186_p12), %492, %v297_v6   ;;  %s213_s17 = scalar_lea.vmem (!%p186_p12), [#allocation3], %s643_s4  ;;  %s658_s25 = scalar_lea.hbm (!%p186_p12), %s705_s3, %s406_s11 }
  0x21   : > { %v218_v11 = vmul.f32 (!%p186_p12), %v214_v8, %v214_v8  ;;  %v219_v12 = vmul.f32 (!%p186_p12), %v215_v9, %v215_v9  ;;  %v217_v13 = vld [vmem:[%s194_s8 + $0x18] sm:$0xff] (!%p186_p12)  ;;  %v220_v14 = vmul.f32 (!%p186_p12), %v216_v10, %v216_v10  ;;  %v444_v18 = vpack.c.bf16 (!%p186_p12), %v215_v9, %v214_v8  ;;  %s337_s19 = sshll.u32 (!%p186_p12), %s213_s17, 4  ;;  %s325_s26 = scalar_lea.sflag (!%p186_p12), [#allocation4], %s643_s4  ;;  %s660_s19 = int_to_ptr.vmem [resolvable:$true] %s337_s19 }
  0x22   : > { %v221_v15 = vmul.f32 (!%p186_p12), %v217_v13, %v217_v13  ;;  %v447_v19 = vpack.c.bf16 (!%p186_p12), %v217_v13, %v216_v10  ;;  %s497_s27 = scalar_lea.vmem (!%p186_p12), %s660_s19, 16  ;;  %s565_s16 = smov (!%p186_p12), [#allocation3]  }
  0x23   : > { %v438_v16 = vpack.c.bf16 (!%p186_p12), %v219_v12, %v218_v11  ;;  %p498_p13 = scmp.ne.s32.totalorder (!%p186_p12), %s660_s19, %s497_s27  ;;  %s501_s28 = sshll.u32 (!%p186_p12), %s565_s16, 4  ;;  %s502_s28 = int_to_ptr.vmem [resolvable:$false] %s501_s28 }
  0x24   : > { %v441_v17 = vpack.c.bf16 (!%p186_p12), %v221_v15, %v220_v14  ;;  %s503_s29 = scalar_lea.vmem (!%p186_p12), %s502_s28, 32  ;;  %p504_p2 = scmp.lt.s32.totalorder (!%p186_p12), %s660_s19, %s502_s28 }
  0x25   : > { %439 = vmatpush3.bf16.msra.mxu0 %v438_v16  ;;  %p499_p0 = pnand %p498_p13, %p624_p6  ;;  %p505_p3 = scmp.lt.s32.totalorder %s503_s29, %s497_s27 }
  0x26   : > { %440 = vmatprep.subr.bf16.mxu0 %v561_v4 }
  0x27   : > { %p500_p1 = pneg %p499_p0  ;;  %p506_p4 = por %p505_p3, %p504_p2 }
  0x29   : > { %442 = vmatpush3.bf16.msra.mxu0 %v441_v17  ;;  %p507_p5 = pnand %p506_p4, %p500_p1 }
  0x2a   : > { %443 = vmatprep.subr.bf16.mxu0 %v561_v4 }
  0x2d   : > { %445 = vmatpush3.bf16.msra.mxu0 %v444_v18 }
  0x2e   : > { %446 = vmatprep.subr.bf16.mxu0 %v561_v4 }
  0x31   : > { %448 = vmatpush3.bf16.msra.mxu0 %v447_v19 }
  0x34   : > { %435 = vmatmul.mubr.msk.f32.vlgmr.msra.gmra.mrb[0].mxu0 %vm223_vm1, %v222_v20 }
  0x9f   : > { %v302_v22 = vpop.permute.xlu0 %301 }
 0x107   : > { %v293_v21 = vpop.f32.mrb[0].mxu0 }
 0x108   : > { %v298_v23 = vmul.f32 0.5, %v293_v21  ;;  %v436_v24 = vpop.f32.mrb[1].mxu0 }
 0x10a   : > { %v304_v25 = vsub.f32 %v302_v22, %v298_v23 }
 0x10c   : > { %v305_v26 = vrot.slane %v304_v25, 4 }
 0x10e   : > { %v306_v27 = vmax.f32 %v304_v25, %v305_v26 }
 0x110   : > { %v307_v28 = vrot.slane %v306_v27, 2 }
 0x112   : > { %v308_v29 = vmax.f32 %v306_v27, %v307_v28 }
 0x114   : > { %v309_v30 = vrot.slane %v308_v29, 1 }
 0x116   : > { %v310_v31 = vmax.f32 %v308_v29, %v309_v30 }
 0x118   : > { %v311_v32 = vsub.f32 %v304_v25, %v310_v31 }
 0x11a   : > { %v312_v33 = vmul.f32 1.442695, %v311_v32 }
 0x11c   : > { %493 = vpow2.f32 %v312_v33 }
 0x126   : > { %v494_v34 = vpop.eup %493 }
 0x127   : > { %v314_v35 = vrot.slane %v494_v34, 4 }
 0x129   : > { %v315_v36 = vadd.f32 %v494_v34, %v314_v35 }
 0x12b   : > { %v316_v37 = vrot.slane %v315_v36, 2 }
 0x12d   : > { %v317_v38 = vadd.f32 %v316_v37, %v315_v36 }
 0x12f   : > { %v318_v39 = vrot.slane %v317_v38, 1 }
 0x131   : > { %v319_v40 = vadd.f32 %v318_v39, %v317_v38 }
 0x133   : > { %495 = vlog2.f32 %v319_v40 }
 0x13d   : > { %v496_v41 = vpop.eup %495 }
 0x13e   : > { %v321_v42 = vmul.f32 0.6931472, %v496_v41 }
 0x140   : > { %v322_v43 = vadd.f32 %v321_v42, %v310_v31 }
 0x142   : > { %323 = vst [vmem:[%s213_s17] sm:$0x1] %v322_v43 }
 0x143   : > { %510 = shalt.err (!%p507_p5)
}
 0x144   : > { %s511_s30 = scalar_lea.hbm %s658_s25, 16  ;;  %s515_s6 = scalar_lea.hbm %s705_s3, 32 }
 0x145   : > { %p512_p7 = scmp.ne.s32.totalorder %s658_s25, %s511_s30  ;;  %p516_p12 = scmp.lt.u32.totalorder %s658_s25, %s705_s3 }
 0x146   : > { %p517_p13 = scmp.lt.u32.totalorder %s515_s6, %s511_s30  ;;  %p519_p1 = scmp.lt.u32.totalorder %s511_s30, %s658_s25 }
 0x147   : > { %p513_p10 = pnand %p512_p7, %p624_p6 }
 0x148   : > { %p518_p0 = por %p517_p13, %p516_p12 }
 0x149   : > { %p514_p11 = pneg %p513_p10 }
 0x14a   : > { %p520_p2 = por %p519_p1, %p518_p0 }
 0x14c   : > { %p521_p3 = pnand %p520_p2, %p514_p11 }
 0x14e   : > { %524 = shalt.err (!%p521_p3)
}
 0x14f   : > { %449 = dma.vmem_to_hbm [thread:$0]  (%p624_p6), %s660_s19, 16, %s658_s25, %s325_s26  }
 0x150 PF: > { %s349_s9 = sand.u32 1, %s547_s12   ;;  %p452_p4 = pnand %p400_p9, %p628_p8 }
 0x151   : > { %s350_s10 = scalar_lea.sflag [#allocation4], %s349_s9 }
 0x152   : > { %542 = dma.done.wait (!%p452_p4), %s350_s10, 16  }
 0x153   : > { %544 = vsyncadd (!%p452_p4), %s350_s10, 4294967280  ;;  %p13_p5 = scmp.ge.s32.totalorder %s609_s18, 4   ;;  %s708_s12 = smov %s551_s13 }
 0x154   : > { %s709_s13 = smov %s555_s14  ;;  %s710_s14 = smov %s622_s21 }
 0x155   : > { %s711_s15 = smov %s609_s18  ;;  %15 = sbr.rel (!%p13_p5) target bundleno = 3 (0x3), region = 110 }
 0x15c   :  { %354 = vsyncpa [#allocation4], 1 }
 0x15d   :  { %356 = vsyncpa [#allocation4 + $0x1], 1 }

</bundles_post_ra>
